<compile_context>
chip_gen: v5e
topology: v5e:2x2
jax: 0.10.0
libtpu: 0.0.40
codegen_flags: <defaults>
</compile_context>

<pallas_src>
import functools

import numpy as np
import jax
import jax.numpy as jnp
from jax.experimental import pallas as pl
from jax.experimental.pallas import tpu as pltpu


def _round_up(v: int, m: int) -> int:
    return -(-v // m) * m


def _build_shift_weight_mats(w1):
    """Reshape conv1 weights (8,1,3,3) into four (32,4) matrices, one per 2x2 pixel shift.

    Row index     o   = (p*2+q)*8 + c   (pool sub-pixel (p,q), conv output channel c)
    Column index  phi = a*2 + bp        (row/col parity of the padded-input phase)
    Entry [u=(m*2+n), o, phi] = w1[c, 0, 2m+a-p, 2n+bp-q] when that tap falls inside the 3x3
    window, else 0.  Then conv1[c, 2i+p, 2j+q] = b1[c] + sum_u (Wm[u] @ X_u)[o, pix], where
    X_u is the flat phase image shifted by (m, n) pooled-pixel units.
    """
    u = np.arange(4); m, n = u // 2, u % 2
    o = np.arange(32); pq, c = o // 8, o % 8; p, q = pq // 2, pq % 2
    phi = np.arange(4); a, bp = phi // 2, phi % 2
    di = (2 * m)[:, None, None] + a[None, None, :] - p[None, :, None]      # (4, 32, 4)
    dj = (2 * n)[:, None, None] + bp[None, None, :] - q[None, :, None]
    valid = (di >= 0) & (di <= 2) & (dj >= 0) & (dj <= 2)
    c_idx = np.broadcast_to(c[None, :, None], di.shape)
    taps = w1.astype(jnp.float32)[c_idx, 0, np.clip(di, 0, 2), np.clip(dj, 0, 2)]
    return jnp.where(jnp.asarray(valid), taps, 0.0)                        # (4, 32, 4)


def dummy_cnn_kernel(f_ref, wg_ref, b1_ref, w2_ref, b2_ref, o_ref, *, row_stride, chunk):
    # f_ref : (4, chb)   VMEM bf16  flat 2x2 phases for this pixel chunk (+ halo lanes)
    # wg_ref: (4, 8, 16) VMEM bf16  conv1 weights per pool sub-pixel over K=16 (shift,phase)
    # b1_ref: (8, 1)     VMEM f32   conv1 bias
    # w2_ref: (1, 8)     VMEM f32   1x1 output-conv weight
    # b2_ref: (1,)       SMEM f32   output-conv bias
    # o_ref : (1, chunk) VMEM f32   sigmoid output lanes for this chunk
    offs = (0, 1, row_stride, row_stride + 1)          # (m, n) shifts in flat-pixel units
    # K=16 contraction operand: 4 lane-shifted views x 4 phases, bf16 for single-pass MXU.
    x16 = jnp.concatenate([f_ref[:, off:off + chunk] for off in offs], axis=0)  # (16, chunk)
    wg = wg_ref[...]                                   # (4, 8, 16)
    b1 = b1_ref[...]                                   # (8, 1) -> broadcasts over lanes
    pooled = None
    for pq in range(4):                                # one MXU dot per pool sub-pixel
        z = jnp.dot(wg[pq], x16, preferred_element_type=jnp.float32)            # (8, chunk)
        z = jnp.maximum(z + b1, 0.0)                   # bias + ReLU in f32 (VPU)
        pooled = z if pooled is None else jnp.maximum(pooled, z)   # running 2x2 max-pool
    logit = jnp.dot(w2_ref[...], pooled, preferred_element_type=jnp.float32) + b2_ref[0]
    o_ref[...] = jax.nn.sigmoid(logit)                 # (1, chunk) lane-dense store


def dummy_cnn_forward(x, w1, b1, w2, b2, *, chunk_lanes=16384):
    """x: (B, 1, H, W) float32 (NCHW).  Returns (B, 1, H//2, W//2) float32."""
    B, C, H, W = x.shape
    assert C == 1 and H % 2 == 0 and W % 2 == 0
    Hh, Wh = H // 2, W // 2
    row_stride = Wh + 1                     # flat-pixel stride between pooled rows
    lseg = (Hh + 1) * row_stride            # flat phase lanes per image
    ltot = B * lseg                         # all batch items concatenated on the lane axis
    ch = min(_round_up(ltot, 128), _round_up(max(chunk_lanes, 128), 128))
    n_chunks = -(-ltot // ch)
    chb = _round_up(ch + row_stride + 2, 128)           # chunk + halo for the shifted views
    ftot = (n_chunks - 1) * ch + chb

    # Compact 2x2 phase decomposition of the zero-padded image, flattened row-major per
    # phase, batch concatenated on lanes, cast to bf16 (~0.5x image bytes into the kernel).
    xpad = jnp.pad(x[:, 0].astype(jnp.float32), ((0, 0), (1, 1), (1, 1)))  # (B, 2Hh+2, 2Wh+2)
    ph = xpad.reshape(B, Hh + 1, 2, Wh + 1, 2).transpose(0, 2, 4, 1, 3)    # (B,2,2,Hh+1,Wh+1)
    f = ph.reshape(B, 4, lseg).transpose(1, 0, 2).reshape(4, ltot)
    f = jnp.pad(f, ((0, 0), (0, ftot - ltot))).astype(jnp.bfloat16)        # (4, ftot)
    # Per-chunk windows with halo (contiguous slices -> XLA fuses with the phase split).
    f_chunks = jnp.stack([f[:, t * ch:t * ch + chb] for t in range(n_chunks)], axis=0)

    wmats = _build_shift_weight_mats(w1)                                   # (4, 32, 4)
    wg = wmats.transpose(1, 0, 2).reshape(4, 8, 16).astype(jnp.bfloat16)   # [pq, c, u*4+phi]
    b1col = b1.astype(jnp.float32).reshape(8, 1)
    w2row = w2.reshape(1, 8).astype(jnp.float32)
    b2f = b2.astype(jnp.float32).reshape(1)

    flops = n_chunks * ch * (4 * 8 * 16 * 2 + 4 * 8 * 2 + 8 * 3 + 2 * 8 + 1)
    cost = pl.CostEstimate(
        flops=flops,
        transcendentals=n_chunks * ch,
        bytes_accessed=int(f_chunks.size * 2 + n_chunks * ch * 4 + wg.size * 2 + 64))

    # Per-step VMEM: 2x input block + 2x output block + in-kernel temporaries, with headroom.
    vmem_est = 2 * (4 * chb * 2 + ch * 4) + 16 * ch * 2 + 2 * 8 * ch * 4 + 2 * ch * 4 + 8192
    vmem_limit = int(min(64 * 1024 * 1024, max(32 * 1024 * 1024, 4 * vmem_est)))

    kernel = functools.partial(dummy_cnn_kernel, row_stride=row_stride, chunk=ch)
    out = pl.pallas_call(
        kernel,
        out_shape=jax.ShapeDtypeStruct((n_chunks, 1, ch), jnp.float32),
        grid=(n_chunks,),
        in_specs=[
            pl.BlockSpec((None, 4, chb), lambda t: (t, 0, 0)),      # phase chunk (+halo)
            pl.BlockSpec((4, 8, 16), lambda t: (0, 0, 0)),          # weights stay resident
            pl.BlockSpec((8, 1), lambda t: (0, 0)),
            pl.BlockSpec((1, 8), lambda t: (0, 0)),
            pl.BlockSpec(memory_space=pltpu.MemorySpace.SMEM),      # b2 scalar
        ],
        out_specs=pl.BlockSpec((None, 1, ch), lambda t: (t, 0, 0)),
        compiler_params=pltpu.CompilerParams(
            dimension_semantics=("parallel",),    # chunks split across v7x TensorCores
            vmem_limit_bytes=vmem_limit),
        cost_estimate=cost,
    )(f_chunks, wg, b1col, w2row, b2f)

    # Drop junk lanes (column j == Wh, rows >= Hh, and lanes beyond the last valid pixel).
    out_flat = out.reshape(n_chunks * ch)[:ltot].reshape(B, lseg)
    out_img = out_flat[:, :Hh * row_stride].reshape(B, Hh, row_stride)[:, :, :Wh]
    return out_img[:, None, :, :]                                          # (B, 1, Hh, Wh)


def reference_forward(x, w1, b1, w2, b2):
    """Pure-JAX reference matching PyTorch semantics (NCHW), full f32."""
    hp = jax.lax.Precision.HIGHEST
    y = jax.lax.conv_general_dilated(
        x, w1, (1, 1), ((1, 1), (1, 1)),
        dimension_numbers=("NCHW", "OIHW", "NCHW"), precision=hp)
    y = jnp.maximum(y + b1[None, :, None, None], 0.0)
    y = jax.lax.reduce_window(y, -jnp.inf, jax.lax.max, (1, 1, 2, 2), (1, 1, 2, 2), "VALID")
    z = jax.lax.conv_general_dilated(
        y, w2, (1, 1), ((0, 0), (0, 0)),
        dimension_numbers=("NCHW", "OIHW", "NCHW"), precision=hp)
    z = z + b2[None, :, None, None]
    return jax.nn.sigmoid(z)


if __name__ == "__main__":
    key = jax.random.PRNGKey(0)
    k_x, k_w1, k_b1, k_w2, k_b2, k_x2, k_x3 = jax.random.split(key, 7)

    # Deterministic synthetic parameters (shapes from DummyCNN.__init__)
    w1 = jax.random.normal(k_w1, (8, 1, 3, 3), jnp.float32) * 0.3   # conv1 weight
    b1 = jax.random.normal(k_b1, (8,), jnp.float32) * 0.1           # conv1 bias
    w2 = jax.random.normal(k_w2, (1, 8, 1, 1), jnp.float32) * 0.3   # output_conv weight
    b2 = jax.random.normal(k_b2, (1,), jnp.float32) * 0.1           # output_conv bias

    def check(x, **kw):
        B, _, H, W = x.shape
        out = jax.block_until_ready(dummy_cnn_forward(x, w1, b1, w2, b2, **kw))
        assert out.shape == (B, 1, H // 2, W // 2), out.shape
        # Tight check: same bf16 quantization of x/w1 as the kernel, exact f32 math otherwise.
        xq = x.astype(jnp.bfloat16).astype(jnp.float32)
        w1q = w1.astype(jnp.bfloat16).astype(jnp.float32)
        ref_q = jax.block_until_ready(reference_forward(xq, w1q, b1, w2, b2))
        err_q = float(jnp.max(jnp.abs(out - ref_q)))
        assert err_q < 1e-3, (x.shape, err_q)
        # Loose check against the full-f32 module semantics (bounds the bf16 input error).
        ref_f = jax.block_until_ready(reference_forward(x, w1, b1, w2, b2))
        err_f = float(jnp.max(jnp.abs(out - ref_f)))
        assert err_f < 3e-2, (x.shape, err_f)

    # Canonical small case: single chunk.
    check(jax.random.normal(k_x, (2, 1, 16, 16), jnp.float32))
    # B=1, non-square, n_pix not a multiple of 128, multiple pixel chunks with halo.
    check(jax.random.normal(k_x2, (1, 1, 24, 40), jnp.float32), chunk_lanes=128)
    # Odd batch, multiple chunks spanning image boundaries.
    check(jax.random.normal(k_x3, (3, 1, 32, 32), jnp.float32), chunk_lanes=256)

    print("KERNEL_OK")
</pallas_src>

<mosaic_0001>
module attributes {stable_mosaic.version = 11 : i64} {
  func.func @dummy_cnn_kernel(%arg0: i32, %arg1: memref<1x4x384xbf16, #tpu.memory_space<vmem>>, %arg2: memref<4x8x16xbf16, #tpu.memory_space<vmem>>, %arg3: memref<8x1xf32, #tpu.memory_space<vmem>>, %arg4: memref<1x8xf32, #tpu.memory_space<vmem>>, %arg5: memref<1xf32, #tpu.memory_space<smem>>, %arg6: memref<1x1x256xf32, #tpu.memory_space<vmem>>) attributes {dimension_semantics = [#tpu.dimension_semantics<parallel>], iteration_bounds = array<i64: 1>, scalar_prefetch = 0 : i64, scratch_operands = 0 : i64, tpu.core_type = #tpu.core_type<tc>, window_params = [{transform_indices = @transform_0, window_bounds = array<i64: 1, 4, 384>}, {pipeline_mode = #tpu.pipeline_mode<synchronous>, transform_indices = @transform_1, window_bounds = array<i64: 4, 8, 16>}, {pipeline_mode = #tpu.pipeline_mode<synchronous>, transform_indices = @transform_2, window_bounds = array<i64: 8, 1>}, {pipeline_mode = #tpu.pipeline_mode<synchronous>, transform_indices = @transform_3, window_bounds = array<i64: 1, 8>}, {transform_indices = @transform_4, window_bounds = array<i64: 1>}, {transform_indices = @transform_5, window_bounds = array<i64: 1, 1, 256>}]} {
    %c0 = arith.constant 0 : index
    %c0_0 = arith.constant 0 : index
    %c0_1 = arith.constant 0 : index
    %0 = vector.load %arg1[%c0, %c0_0, %c0_1] : memref<1x4x384xbf16, #tpu.memory_space<vmem>>, vector<1x4x256xbf16>
    %1 = vector.shape_cast %0 : vector<1x4x256xbf16> to vector<4x256xbf16>
    %c0_2 = arith.constant 0 : index
    %c0_3 = arith.constant 0 : index
    %c1 = arith.constant 1 : index
    %2 = vector.load %arg1[%c0_2, %c0_3, %c1] : memref<1x4x384xbf16, #tpu.memory_space<vmem>>, vector<1x4x256xbf16>
    %3 = vector.shape_cast %2 : vector<1x4x256xbf16> to vector<4x256xbf16>
    %c0_4 = arith.constant 0 : index
    %c0_5 = arith.constant 0 : index
    %c9 = arith.constant 9 : index
    %4 = vector.load %arg1[%c0_4, %c0_5, %c9] : memref<1x4x384xbf16, #tpu.memory_space<vmem>>, vector<1x4x256xbf16>
    %5 = vector.shape_cast %4 : vector<1x4x256xbf16> to vector<4x256xbf16>
    %c0_6 = arith.constant 0 : index
    %c0_7 = arith.constant 0 : index
    %c10 = arith.constant 10 : index
    %6 = vector.load %arg1[%c0_6, %c0_7, %c10] : memref<1x4x384xbf16, #tpu.memory_space<vmem>>, vector<1x4x256xbf16>
    %7 = vector.shape_cast %6 : vector<1x4x256xbf16> to vector<4x256xbf16>
    %8 = tpu.concatenate %1, %3, %5, %7 in 0 : vector<4x256xbf16>, vector<4x256xbf16>, vector<4x256xbf16>, vector<4x256xbf16> -> vector<16x256xbf16>
    %c0_8 = arith.constant 0 : index
    %c0_9 = arith.constant 0 : index
    %c0_10 = arith.constant 0 : index
    %9 = vector.load %arg2[%c0_8, %c0_9, %c0_10] : memref<4x8x16xbf16, #tpu.memory_space<vmem>>, vector<4x8x16xbf16>
    %c0_11 = arith.constant 0 : index
    %c0_12 = arith.constant 0 : index
    %10 = vector.load %arg3[%c0_11, %c0_12] : memref<8x1xf32, #tpu.memory_space<vmem>>, vector<8x1xf32>
    %11 = vector.extract_strided_slice %9 {offsets = [0, 0, 0], sizes = [1, 8, 16], strides = [1, 1, 1]} : vector<4x8x16xbf16> to vector<1x8x16xbf16>
    %12 = vector.shape_cast %11 : vector<1x8x16xbf16> to vector<8x16xbf16>
    %cst = arith.constant dense<0.000000e+00> : vector<8x256xf32>
    %13 = tpu.matmul %12, %8, %cst {dimension_numbers = #tpu.dot_dimension_numbers<[1], [0], [0], [1], [0, 0, 1, 1], [], []>} : vector<8x16xbf16>, vector<16x256xbf16>, vector<8x256xf32> -> vector<8x256xf32>
    %14 = vector.broadcast %10 : vector<8x1xf32> to vector<8x256xf32>
    %15 = arith.addf %13, %14 : vector<8x256xf32>
    %cst_13 = arith.constant 0.000000e+00 : f32
    %16 = vector.broadcast %cst_13 : f32 to vector<8x256xf32>
    %17 = arith.maximumf %15, %16 : vector<8x256xf32>
    %18 = vector.extract_strided_slice %9 {offsets = [1, 0, 0], sizes = [1, 8, 16], strides = [1, 1, 1]} : vector<4x8x16xbf16> to vector<1x8x16xbf16>
    %19 = vector.shape_cast %18 : vector<1x8x16xbf16> to vector<8x16xbf16>
    %cst_14 = arith.constant dense<0.000000e+00> : vector<8x256xf32>
    %20 = tpu.matmul %19, %8, %cst_14 {dimension_numbers = #tpu.dot_dimension_numbers<[1], [0], [0], [1], [0, 0, 1, 1], [], []>} : vector<8x16xbf16>, vector<16x256xbf16>, vector<8x256xf32> -> vector<8x256xf32>
    %21 = vector.broadcast %10 : vector<8x1xf32> to vector<8x256xf32>
    %22 = arith.addf %20, %21 : vector<8x256xf32>
    %cst_15 = arith.constant 0.000000e+00 : f32
    %23 = vector.broadcast %cst_15 : f32 to vector<8x256xf32>
    %24 = arith.maximumf %22, %23 : vector<8x256xf32>
    %25 = arith.maximumf %17, %24 : vector<8x256xf32>
    %26 = vector.extract_strided_slice %9 {offsets = [2, 0, 0], sizes = [1, 8, 16], strides = [1, 1, 1]} : vector<4x8x16xbf16> to vector<1x8x16xbf16>
    %27 = vector.shape_cast %26 : vector<1x8x16xbf16> to vector<8x16xbf16>
    %cst_16 = arith.constant dense<0.000000e+00> : vector<8x256xf32>
    %28 = tpu.matmul %27, %8, %cst_16 {dimension_numbers = #tpu.dot_dimension_numbers<[1], [0], [0], [1], [0, 0, 1, 1], [], []>} : vector<8x16xbf16>, vector<16x256xbf16>, vector<8x256xf32> -> vector<8x256xf32>
    %29 = vector.broadcast %10 : vector<8x1xf32> to vector<8x256xf32>
    %30 = arith.addf %28, %29 : vector<8x256xf32>
    %cst_17 = arith.constant 0.000000e+00 : f32
    %31 = vector.broadcast %cst_17 : f32 to vector<8x256xf32>
    %32 = arith.maximumf %30, %31 : vector<8x256xf32>
    %33 = arith.maximumf %25, %32 : vector<8x256xf32>
    %34 = vector.extract_strided_slice %9 {offsets = [3, 0, 0], sizes = [1, 8, 16], strides = [1, 1, 1]} : vector<4x8x16xbf16> to vector<1x8x16xbf16>
    %35 = vector.shape_cast %34 : vector<1x8x16xbf16> to vector<8x16xbf16>
    %cst_18 = arith.constant dense<0.000000e+00> : vector<8x256xf32>
    %36 = tpu.matmul %35, %8, %cst_18 {dimension_numbers = #tpu.dot_dimension_numbers<[1], [0], [0], [1], [0, 0, 1, 1], [], []>} : vector<8x16xbf16>, vector<16x256xbf16>, vector<8x256xf32> -> vector<8x256xf32>
    %37 = vector.broadcast %10 : vector<8x1xf32> to vector<8x256xf32>
    %38 = arith.addf %36, %37 : vector<8x256xf32>
    %cst_19 = arith.constant 0.000000e+00 : f32
    %39 = vector.broadcast %cst_19 : f32 to vector<8x256xf32>
    %40 = arith.maximumf %38, %39 : vector<8x256xf32>
    %41 = arith.maximumf %33, %40 : vector<8x256xf32>
    %c0_20 = arith.constant 0 : index
    %c0_21 = arith.constant 0 : index
    %42 = vector.load %arg4[%c0_20, %c0_21] : memref<1x8xf32, #tpu.memory_space<vmem>>, vector<1x8xf32>
    %cst_22 = arith.constant dense<0.000000e+00> : vector<1x256xf32>
    %43 = tpu.matmul %42, %41, %cst_22 {dimension_numbers = #tpu.dot_dimension_numbers<[1], [0], [0], [1], [0, 0, 1, 1], [], []>} : vector<1x8xf32>, vector<8x256xf32>, vector<1x256xf32> -> vector<1x256xf32>
    %c0_23 = arith.constant 0 : index
    %44 = memref.load %arg5[%c0_23] : memref<1xf32, #tpu.memory_space<smem>>
    %45 = vector.broadcast %44 : f32 to vector<1x256xf32>
    %46 = arith.addf %43, %45 : vector<1x256xf32>
    %47 = arith.negf %46 : vector<1x256xf32>
    %48 = math.exp %47 : vector<1x256xf32>
    %cst_24 = arith.constant 1.000000e+00 : f32
    %49 = vector.broadcast %cst_24 : f32 to vector<1x256xf32>
    %50 = arith.addf %49, %48 : vector<1x256xf32>
    %51 = arith.divf %49, %50 : vector<1x256xf32>
    %c0_25 = arith.constant 0 : index
    %c0_26 = arith.constant 0 : index
    %c0_27 = arith.constant 0 : index
    %52 = vector.load %arg6[%c0_25, %c0_26, %c0_27] : memref<1x1x256xf32, #tpu.memory_space<vmem>>, vector<1x1x256xf32>
    %53 = vector.shape_cast %52 : vector<1x1x256xf32> to vector<1x256xf32>
    %54 = vector.shape_cast %51 : vector<1x256xf32> to vector<1x1x256xf32>
    tpu.vector_store %arg6[%c0_25, %c0_26, %c0_27], %54 {strides = array<i32>} : memref<1x1x256xf32, #tpu.memory_space<vmem>>, vector<1x1x256xf32>,
    return
  }
  func.func @transform_0(%arg0: i32) -> (i32, i32, i32) {
    %c0_i32 = arith.constant 0 : i32
    %c0_i32_0 = arith.constant 0 : i32
    %c0_i32_1 = arith.constant 0 : i32
    return %arg0, %c0_i32, %c0_i32_0 : i32, i32, i32
  }
  func.func @transform_1(%arg0: i32) -> (i32, i32, i32) {
    %c0_i32 = arith.constant 0 : i32
    %c0_i32_0 = arith.constant 0 : i32
    %c0_i32_1 = arith.constant 0 : i32
    %c0_i32_2 = arith.constant 0 : i32
    return %c0_i32, %c0_i32_0, %c0_i32_1 : i32, i32, i32
  }
  func.func @transform_2(%arg0: i32) -> (i32, i32) {
    %c0_i32 = arith.constant 0 : i32
    %c0_i32_0 = arith.constant 0 : i32
    %c0_i32_1 = arith.constant 0 : i32
    return %c0_i32, %c0_i32_0 : i32, i32
  }
  func.func @transform_3(%arg0: i32) -> (i32, i32) {
    %c0_i32 = arith.constant 0 : i32
    %c0_i32_0 = arith.constant 0 : i32
    %c0_i32_1 = arith.constant 0 : i32
    return %c0_i32, %c0_i32_0 : i32, i32
  }
  func.func @transform_4(%arg0: i32) -> i32 {
    %c0_i32 = arith.constant 0 : i32
    %c0_i32_0 = arith.constant 0 : i32
    return %c0_i32 : i32
  }
  func.func @transform_5(%arg0: i32) -> (i32, i32, i32) {
    %c0_i32 = arith.constant 0 : i32
    %c0_i32_0 = arith.constant 0 : i32
    %c0_i32_1 = arith.constant 0 : i32
    return %arg0, %c0_i32, %c0_i32_0 : i32, i32, i32
  }
}

</mosaic_0001>

<bundles_post_ra>
// kernel: tpu_custom_call.1
= control target key start
LH: loop header
LB: loop body
LE: loop exit
PB: predicated region body
PF: predicated region fallthrough
CT: control target
= control target key end

     0   :  { %11 = vsyncpa [#allocation4], 0  ;;  %s528_s0 = inlined_call_operand.vmem [shape: bf16[1,4,384], index: 0, kind: input, shape index: {}]   ;;  %s529_s1 = inlined_call_operand.hbm [shape: bf16[4,8,16], index: 1, kind: input, shape index: {}]   ;;  %s530_s2 = inlined_call_operand.vmem [shape: f32[8,1], index: 2, kind: input, shape index: {}]   ;;  %s531_s3 = inlined_call_operand.vmem [shape: f32[1,8], index: 3, kind: input, shape index: {}]   ;;  %s532_s4 = inlined_call_operand.<no memory space> [shape: f32[1], index: 4, kind: input, shape index: {}]   ;;  %s533_s5 = inlined_call_operand.hbm [shape: f32[1,1,256], index: 5, kind: output, shape index: {}]  }
   0x1   :  { %12 = vsyncpa [#allocation5], 0  ;;  %s19_s20 = sshll.u32 %s529_s1, 4  ;;  %s449_s21 = smov [#allocation3]   ;;  %s20_s20 = int_to_ptr.hbm [resolvable:$true] %s19_s20 }
   0x2   :  { %s21_s22 = sshll.u32 %s449_s21, 4  ;;  %s450_s23 = smov 64   ;;  %s22_s22 = int_to_ptr.vmem [resolvable:$true] %s21_s22 }
   0x3   :  { %s451_s24 = smov 4  }
   0x4   :  { %27 = dma.hbm_to_vmem [thread:$0]  %s20_s20, 256, %s22_s22, [#allocation4], %s450_s23, %s450_s23, %s451_s24  }
   0x5   :  { %445 = dma.done.wait [#allocation4], 256  }
   0x6   :  { %446 = vsyncadd [#allocation4], 4294967040  ;;  %v39_v0 = vld [vmem:[%s528_s0] sm:$0xf]  ;;  %s452_s1 = smov 127   ;;  %s453_s29 = smov 119  }
   0x7   :  { %42 = vst [vmem:[#allocation1] ss:$4 sm:$0xff] %v39_v0  ;;  %v40_v1 = vld [vmem:[%s528_s0] sm:$0x3f]  ;;  %s454_s0 = smov 118   ;;  %v455_v18 = vmov 0  }
   0x8   :  { %v118_v16 = vld [vmem:[%s530_s2] sm:$0xff]  ;;  %388 = vset.pattern.permute.xlu0 %v455_v18  ;;  %vm60_vm0 = vcmask 1039360   ;;  %vm97_vm1 = vcmask 1041408   ;;  %vm77_vm2 = vcmask 973824   ;;  %vm102_vm3 = vcmask 1043456   ;;  %s358_s12 = sshll.u32 %s533_s5, 4  ;;  %s359_s12 = int_to_ptr.hbm [resolvable:$true] %s358_s12 }
   0x9   :  { %vm94_vm4 = vcmask 965632   ;;  %vm107_vm5 = vcmask 1045504   ;;  %v114_v28 = vld [vmem:[#allocation3] sm:$0xf]  ;;  %vm124_vm6 = vcmask 130048   ;;  %vm258_vm7 = vcmask 64512  }
   0xa   :  { %v115_v29 = vld [vmem:[#allocation3 + $0x4] sm:$0xf]  ;;  %v116_v38 = vld [vmem:[#allocation3 + $0x8] sm:$0xf]  ;;  %v117_v39 = vld [vmem:[#allocation3 + $0xc] sm:$0xf] }
   0xb   :  { %vm343_vm15 = vcmask 1040384  }
   0xe   :  { %v43_v2 = vld.sshfl [vmem:[#allocation1] sm:$0xff pattern:$0x73625140]  ;;  %v44_v3 = vld.sshfl [vmem:[#allocation1 + $0x8] sm:$0xff pattern:$0x73625140] }
   0xf   :  { %47 = vst [vmem:[#allocation1 + $0x1] ss:$4 sm:$0xff] %v40_v1 }
  0x16   :  { %v50_v4 = vld.sshfl [vmem:[#allocation1 + $0x8] sm:$0xff pattern:$0x73625140]  ;;  %v52_v5 = vld.sshfl [vmem:[#allocation1 + $0x10] sm:$0xff pattern:$0x73625140] }
  0x17   :  { %56 = vrot.lane.b32.xlu0 %v50_v4, %s452_s1  ;;  %v48_v6 = vld.sshfl [vmem:[#allocation1] sm:$0xff pattern:$0x73625140] }
  0x18   :  { %64 = vst [vmem:[#allocation1 + $0x2] ss:$4 sm:$0xff] %v40_v1  ;;  %54 = vrot.lane.b32.xlu2 %v48_v6, %s452_s1  ;;  %v255_v4 = vld [vmem:[%s531_s3] sm:$0x1]  ;;  %s456_s3 = smov [#allocation6]  }
  0x1f   :  { %58 = vrot.lane.b32.xlu0 %v52_v5, %s452_s1  ;;  %v65_v7 = vld.sshfl [vmem:[#allocation1] sm:$0xff pattern:$0x73625140]  ;;  %v67_v8 = vld.sshfl [vmem:[#allocation1 + $0x8] sm:$0xff pattern:$0x73625140] }
  0x20   :  { %73 = vrot.lane.b32.xlu1 %v67_v8, %s453_s29  ;;  %v69_v9 = vld.sshfl [vmem:[#allocation1 + $0x10] sm:$0xff pattern:$0x73625140] }
  0x21   :  { %81 = vst [vmem:[#allocation1 + $0x3] ss:$4 sm:$0xff] %v40_v1 }
  0x28   :  { %75 = vrot.lane.b32.xlu1 %v69_v9, %s453_s29  ;;  %v86_v10 = vld.sshfl [vmem:[#allocation1 + $0x10] sm:$0xff pattern:$0x73625140]  ;;  %v84_v11 = vld.sshfl [vmem:[#allocation1 + $0x8] sm:$0xff pattern:$0x73625140] }
  0x29   :  { %92 = vrot.lane.b32.xlu0 %v86_v10, %s454_s0  ;;  %90 = vrot.lane.b32.xlu2 %v84_v11, %s454_s0  ;;  %v82_v12 = vld.sshfl [vmem:[#allocation1] sm:$0xff pattern:$0x73625140] }
  0x30   :  { %71 = vrot.lane.b32.xlu1 %v65_v7, %s453_s29 }
  0x31   :  { %88 = vrot.lane.b32.xlu2 %v82_v12, %s454_s0  ;;  %121 = vperm.xlu0 %388, %v118_v16   ;;  %v257_v16 = vstv %s532_s4  ;;  %s356_s4 = sshll.u32 %s456_s3, 4  ;;  %s357_s4 = int_to_ptr.vmem [resolvable:$true] %s356_s4 }
  0x72   :  { %v55_v14 = vpop.permute.xlu2 %54 }
  0x83   :  { %v91_v19 = vpop.permute.xlu2 %90 }
  0x89   :  { %v57_v13 = vpop.permute.xlu0 %56 }
  0x8a   :  { %v61_v30 = vsel %vm60_vm0, %v55_v14, %v57_v13 }
  0x8b   :  { %v89_v31 = vpop.permute.xlu2 %88  ;;  %v99_v33 = vsel %vm97_vm1, %v43_v2, %v61_v30 }
  0x8c   :  { %v95_v35 = vsel %vm94_vm4, %v89_v31, %v91_v19 }
  0x91   :  { %v59_v15 = vpop.permute.xlu0 %58 }
  0x92   :  { %v74_v17 = vpop.permute.xlu1 %73  ;;  %v62_v20 = vsel %vm60_vm0, %v57_v13, %v59_v15 }
  0x93   :  { %v101_v22 = vsel %vm97_vm1, %v44_v3, %v62_v20 }
  0x9a   :  { %v76_v21 = vpop.permute.xlu1 %75 }
  0x9b   :  { %v79_v23 = vsel %vm77_vm2, %v74_v17, %v76_v21  ;;  %v93_v24 = vpop.permute.xlu0 %92 }
  0x9c   :  { %v106_v25 = vsel %vm102_vm3, %v101_v22, %v79_v23  ;;  %v96_v26 = vsel %vm94_vm4, %v91_v19, %v93_v24 }
  0x9d   :  { %v112_v27 = vsel %vm107_vm5, %v106_v25, %v96_v26 }
  0x9e   :  { %148 = vmatpush.bf16.msra.mxu1 %v112_v27  ;;  %179 = vmatpush.bf16.msra.mxu3 %v112_v27 }
  0xa1   :  { %369 = vmatmul.msk.bf16.vlgmr.msra.gmra.mxu1 %vm124_vm6, %v114_v28  ;;  %371 = vmatmul.msk.bf16.vlgmr.msra.gmra.mxu3 %vm124_vm6, %v115_v29 }
  0xa2   :  { %212 = vmatpush.bf16.msrb.mxu1 %v112_v27  ;;  %245 = vmatpush.bf16.msrb.mxu3 %v112_v27  ;;  %v72_v32 = vpop.permute.xlu1 %71 }
  0xa3   :  { %v78_v34 = vsel %vm77_vm2, %v72_v32, %v74_v17  ;;  %v122_v44 = vpop.permute.xlu0 %121 }
  0xa4   :  { %v104_v36 = vsel %vm102_vm3, %v99_v33, %v78_v34 }
  0xa5   :  { %v109_v37 = vsel %vm107_vm5, %v104_v36, %v95_v35 }
  0xa6   :  { %135 = vmatpush.bf16.msra.mxu0 %v109_v37  ;;  %166 = vmatpush.bf16.msra.mxu2 %v109_v37 }
  0xa9   :  { %368 = vmatmul.msk.bf16.vlgmr.msra.gmra.mxu0 %vm124_vm6, %v114_v28  ;;  %370 = vmatmul.msk.bf16.vlgmr.msra.gmra.mxu2 %vm124_vm6, %v115_v29 }
  0xaa   :  { %199 = vmatpush.bf16.msrb.mxu0 %v109_v37  ;;  %232 = vmatpush.bf16.msrb.mxu2 %v109_v37 }
  0xb1   :  { %373 = vmatmul.msk.bf16.vlgmr.msrb.gmra.mxu1 %vm124_vm6, %v116_v38  ;;  %375 = vmatmul.msk.bf16.vlgmr.msrb.gmra.mxu3 %vm124_vm6, %v117_v39 }
  0xb9   :  { %372 = vmatmul.msk.bf16.vlgmr.msrb.gmra.mxu0 %vm124_vm6, %v116_v38  ;;  %374 = vmatmul.msk.bf16.vlgmr.msrb.gmra.mxu2 %vm124_vm6, %v117_v39 }
 0x11e   :  { %v150_v40 = vpop.f32.mrf.mxu1 }
 0x11f   :  { %v151_v47 = vadd.f32 %v150_v40, %v122_v44  ;;  %v346_v40 = vlaneseq }
 0x121   :  { %v155_v52 = vmax.f32 %v151_v47, 0.0  ;;  %vm348_vm1 = vcmp.lt.s32.totalorder %v346_v40, 256 }
 0x124   :  { %v181_v41 = vpop.f32.mrf.mxu3 }
 0x125   :  { %v182_v48 = vadd.f32 %v181_v41, %v122_v44 }
 0x126   :  { %v137_v42 = vpop.f32.mrf.mxu0  ;;  %v152_v43 = vpop.f32.mrf.mxu1 }
 0x127   :  { %v186_v53 = vmax.f32 %v182_v48, 0.0  ;;  %v138_v62 = vadd.f32 %v137_v42, %v122_v44 }
 0x129   :  { %v188_v58 = vmax.f32 %v155_v52, %v186_v53  ;;  %v154_v5 = vmax.f32 %v138_v62, 0.0 }
 0x12c   :  { %v168_v45 = vpop.f32.mrf.mxu2  ;;  %v183_v46 = vpop.f32.mrf.mxu3 }
 0x12d   :  { %v169_v57 = vadd.f32 %v168_v45, %v122_v44 }
 0x12e   :  { %v139_v49 = vpop.f32.mrf.mxu0  ;;  %v214_v50 = vpop.f32.mrf.mxu1 }
 0x12f   :  { %v215_v51 = vadd.f32 %v214_v50, %v122_v44  ;;  %v185_v2 = vmax.f32 %v169_v57, 0.0 }
 0x131   :  { %v219_v54 = vmax.f32 %v215_v51, 0.0  ;;  %v187_v9 = vmax.f32 %v154_v5, %v185_v2 }
 0x133   :  { %v221_v63 = vmax.f32 %v188_v58, %v219_v54 }
 0x134   :  { %v170_v55 = vpop.f32.mrf.mxu2  ;;  %v247_v56 = vpop.f32.mrf.mxu3 }
 0x135   :  { %v248_v59 = vadd.f32 %v247_v56, %v122_v44 }
 0x136   :  { %v201_v60 = vpop.f32.mrf.mxu0  ;;  %v216_v61 = vpop.f32.mrf.mxu1 }
 0x137   :  { %v252_v0 = vmax.f32 %v248_v59, 0.0  ;;  %v202_v1 = vadd.f32 %v201_v60, %v122_v44 }
 0x139   :  { %v254_v3 = vmax.f32 %v221_v63, %v252_v0  ;;  %v218_v6 = vmax.f32 %v202_v1, 0.0 }
 0x13b   :  { %297 = vmatpush.msra.mxu1 %v254_v3  ;;  %v220_v12 = vmax.f32 %v187_v9, %v218_v6 }
 0x13c   :  { %v234_v7 = vpop.f32.mrf.mxu2  ;;  %v249_v8 = vpop.f32.mrf.mxu3  ;;  %377 = vmatmul.msk.f32.vlgmr.msra.gmra.mxu1 %vm258_vm7, %v255_v4 }
 0x13d   :  { %v235_v10 = vadd.f32 %v234_v7, %v122_v44 }
 0x13e   :  { %v203_v11 = vpop.f32.mrf.mxu0 }
 0x13f   :  { %v251_v13 = vmax.f32 %v235_v10, 0.0 }
 0x141   :  { %v253_v14 = vmax.f32 %v220_v12, %v251_v13 }
 0x143   :  { %277 = vmatpush.msra.mxu0 %v253_v14 }
 0x144   :  { %v236_v15 = vpop.f32.mrf.mxu2  ;;  %376 = vmatmul.msk.f32.vlgmr.msra.gmra.mxu0 %vm258_vm7, %v255_v4 }
 0x1b9   :  { %v299_v17 = vpop.f32.mrf.mxu1 }
 0x1ba   :  { %v300_v18 = vadd.f32 %v299_v17, %v257_v16 }
 0x1bc   :  { %v379_v19 = vmul.f32 -1.442695, %v300_v18 }
 0x1be   :  { %389 = vpow2.f32 %v379_v19 }
 0x1c1   :  { %v279_v20 = vpop.f32.mrf.mxu0 }
 0x1c2   :  { %v280_v21 = vadd.f32 %v279_v20, %v257_v16 }
 0x1c4   :  { %v390_v22 = vpop.eup %389  ;;  %v378_v23 = vmul.f32 -1.442695, %v280_v21 }
 0x1c5   :  { %v309_v24 = vadd.f32 1.0, %v390_v22 }
 0x1c6   :  { %391 = vpow2.f32 %v378_v23 }
 0x1c7   :  { %393 = vrcp.f32 %v309_v24  ;;  %vm330_vm8 = vweird.f32 %v309_v24  ;;  %v336_v33 = vand.u32 2147483648, %v309_v24  ;;  %v334_v35 = vand.u32 2147483647, %v309_v24 }
 0x1c9   :  { %v337_v39 = vor.u32 1.1754944e-38, %v336_v33  ;;  %vm335_vm12 = vcmp.eq.f32.partialorder %v334_v35, 8.507059e+37 }
 0x1cc   :  { %v392_v25 = vpop.eup %391 }
 0x1cd   :  { %v394_v26 = vpop.eup %393  ;;  %v308_v27 = vadd.f32 1.0, %v392_v25 }
 0x1ce   :  { %v326_v28 = vmul.f32 %v394_v26, %v309_v24  ;;  %vm331_vm9 = vweird.f32 %v394_v26 }
 0x1cf   :  { %395 = vrcp.f32 %v308_v27  ;;  %vm332_vm10 = vmor %vm330_vm8, %vm331_vm9  ;;  %v321_v38 = vand.u32 2147483648, %v308_v27  ;;  %v319_v42 = vand.u32 2147483647, %v308_v27  ;;  %vm315_vm13 = vweird.f32 %v308_v27 }
 0x1d0   :  { %v327_v29 = vsub.f32 1.0, %v326_v28 }
 0x1d1   :  { %v322_v45 = vor.u32 1.1754944e-38, %v321_v38  ;;  %vm320_vm0 = vcmp.eq.f32.partialorder %v319_v42, 8.507059e+37 }
 0x1d2   :  { %v328_v30 = vmul.f32 %v394_v26, %v327_v29 }
 0x1d4   :  { %v329_v31 = vadd.f32 %v394_v26, %v328_v30 }
 0x1d5   :  { %v396_v32 = vpop.eup %395 }
 0x1d6   :  { %v311_v34 = vmul.f32 %v396_v32, %v308_v27  ;;  %v333_v37 = vsel %vm332_vm10, %v394_v26, %v329_v31  ;;  %vm316_vm11 = vweird.f32 %v396_v32 }
 0x1d7   :  { %v338_v43 = vsel %vm335_vm12, %v337_v39, %v333_v37  ;;  %vm317_vm14 = vmor %vm315_vm13, %vm316_vm11 }
 0x1d8   :  { %v312_v36 = vsub.f32 1.0, %v311_v34  ;;  %v342_v47 = vrot.slane %v338_v43, 7 }
 0x1da   :  { %v313_v41 = vmul.f32 %v396_v32, %v312_v36 }
 0x1dc   :  { %v314_v44 = vadd.f32 %v396_v32, %v313_v41 }
 0x1de   :  { %v318_v46 = vsel %vm317_vm14, %v396_v32, %v314_v44 }
 0x1df   :  { %v323_v48 = vsel %vm320_vm0, %v322_v45, %v318_v46 }
 0x1e0   :  { %v344_v49 = vsel %vm343_vm15, %v323_v48, %v342_v47 }
 0x1e1   :  { %350 = vst.msk [vmem:[#allocation6] sm:$0x3] %vm348_vm1, %v344_v49 }
 0x1e2   :  { %361 = dma.vmem_to_hbm [thread:$0]  %s357_s4, 32, %s359_s12, [#allocation5]  }
 0x1e3   :  { %447 = dma.done.wait [#allocation5], 32  }
 0x1e4   :  { %448 = vsyncadd [#allocation5], 4294967264 }
 0x1e5   :  { %366 = vsyncpa [#allocation4], 1 }
 0x1e6   :  { %367 = vsyncpa [#allocation5], 1 }

</bundles_post_ra>
